<compile_context>
chip_gen: v5e
topology: v5e:2x2
jax: 0.10.0
libtpu: 0.0.40
codegen_flags: <defaults>
</compile_context>

<pallas_src>
import jax
import jax.numpy as jnp
from jax.experimental import pallas as pl
from jax.experimental.pallas import tpu as pltpu

NUM_STATE = 2        # MountainCar observation dim
NUM_ACTION = 3       # MountainCar action count
HIDDEN = 128
ACT_PAD = 128        # lane-padded action width used inside the kernel
NEG_MASK = -1e30     # baked into padded bias lanes -> exp() underflows to 0
MAX_BLOCK_B = 2048   # rows per grid step; ~10 MiB live VMEM at this size
VMEM_LIMIT_BYTES = 40 * 1024 * 1024   # headroom under v7x 64 MiB physical VMEM


def _round_up(n, m):
    return ((n + m - 1) // m) * m


def _fc1_dtype():
    """bf16 fc1 on v6e/v7x (they have a bf16 VALU); f32 on v5e / anything else."""
    try:
        kind = jax.devices()[0].device_kind.lower()
    except Exception:
        return jnp.float32
    return jnp.bfloat16 if ("v6" in kind or "v7" in kind) else jnp.float32


def actor_kernel(x_ref, w1_ref, b1_ref, w2_ref, b2_ref, out_ref):
    # ---- fc1 + ReLU on the VPU -------------------------------------------
    # K == NUM_STATE == 2: two rank-1 broadcast FMAs beat an MXU matmul and
    # let x stay unpadded at [TB, NUM_STATE].  Math dtype follows w1 (bf16 on
    # v6e/v7x, f32 on v5e) -- a single cast of the x tile.
    x = x_ref[...].astype(w1_ref.dtype)               # (TB, NUM_STATE)
    h = b1_ref[...]                                    # (1, HIDDEN), broadcasts over rows
    for k in range(NUM_STATE):                         # unrolled at trace time
        h = h + x[:, k:k + 1] * w1_ref[k:k + 1, :]
    h = jnp.maximum(h, 0.0)                            # (TB, HIDDEN)

    # ---- action head on the MXU (bf16 operands, f32 accumulate) -----------
    logits = jnp.dot(h.astype(jnp.bfloat16), w2_ref[...],
                     preferred_element_type=jnp.float32)
    logits = logits + b2_ref[...]                      # padded lanes carry -1e30

    # ---- softmax over actions (padded lanes: exp(-1e30 - m) == 0) ---------
    m = jnp.max(logits, axis=1, keepdims=True)
    e = jnp.exp(logits - m)
    denom = jnp.sum(e, axis=1, keepdims=True)
    probs = e / denom                                  # exact divide: rows sum to 1

    # Store only the real action columns (masked vst; no 128-wide writeback).
    out_ref[...] = probs[:, :NUM_ACTION]


def prepare_params(w1, b1, w2, b2, fc1_dtype=None):
    """One-time weight prep; keep the result resident and reuse every call.

    Inputs are in [in_features, out_features] layout (torch weights transposed):
      w1: [NUM_STATE, HIDDEN], b1: [HIDDEN], w2: [HIDDEN, NUM_ACTION], b2: [NUM_ACTION]
    """
    if fc1_dtype is None:
        fc1_dtype = _fc1_dtype()
    w1p = w1.astype(fc1_dtype)                                       # (2, 128)
    b1p = b1.reshape(1, HIDDEN).astype(fc1_dtype)                    # (1, 128)
    w2p = (jnp.zeros((HIDDEN, ACT_PAD), jnp.bfloat16)
           .at[:, :NUM_ACTION].set(w2.astype(jnp.bfloat16)))         # (128, 128) bf16
    b2p = (jnp.full((1, ACT_PAD), NEG_MASK, jnp.float32)
           .at[0, :NUM_ACTION].set(b2.astype(jnp.float32)))          # (1, 128) f32
    return w1p, b1p, w2p, b2p


def _batch_tiles(B):
    """Balanced batch tiling: TB multiple of 8, >=2 grid steps once B >= 16
    (so both v7x TensorCores get work), tiles balanced to avoid the
    'B just above a multiple of MAX_BLOCK_B' padding cliff."""
    Bp8 = _round_up(max(B, 1), 8)
    steps = pl.cdiv(Bp8, MAX_BLOCK_B)
    if Bp8 >= 16:
        steps = max(steps, 2)
    TB = _round_up(pl.cdiv(Bp8, steps), 8)
    Bp = _round_up(Bp8, TB)
    return TB, Bp


def actor_forward(x, params):
    """x: [B, NUM_STATE]; params from prepare_params(). Returns [B, NUM_ACTION] f32."""
    w1p, b1p, w2p, b2p = params
    B = x.shape[0]
    TB, Bp = _batch_tiles(B)

    # Small-B hygiene: these are no-ops when x is already f32 with B % 8 == 0.
    if x.dtype != jnp.float32:
        x = x.astype(jnp.float32)
    if Bp != B:
        x = jnp.pad(x, ((0, Bp - B), (0, 0)))

    weight_bytes = sum(int(a.size) * a.dtype.itemsize for a in (w1p, b1p, w2p, b2p))
    cost = pl.CostEstimate(
        flops=2 * Bp * (NUM_STATE * HIDDEN + HIDDEN * ACT_PAD),
        transcendentals=Bp * ACT_PAD,
        bytes_accessed=4 * Bp * (NUM_STATE + NUM_ACTION) + weight_bytes,
    )

    out = pl.pallas_call(
        actor_kernel,
        out_shape=jax.ShapeDtypeStruct((Bp, NUM_ACTION), jnp.float32),
        grid_spec=pltpu.PrefetchScalarGridSpec(
            num_scalar_prefetch=0,
            grid=(Bp // TB,),
            in_specs=[
                pl.BlockSpec((TB, NUM_STATE), lambda i: (i, 0)),      # x tile
                pl.BlockSpec((NUM_STATE, HIDDEN), lambda i: (0, 0)),  # w1 (resident)
                pl.BlockSpec((1, HIDDEN), lambda i: (0, 0)),          # b1 (resident)
                pl.BlockSpec((HIDDEN, ACT_PAD), lambda i: (0, 0)),    # w2 (resident)
                pl.BlockSpec((1, ACT_PAD), lambda i: (0, 0)),         # b2+mask (resident)
            ],
            out_specs=pl.BlockSpec((TB, NUM_ACTION), lambda i: (i, 0)),
        ),
        compiler_params=pltpu.CompilerParams(
            dimension_semantics=("parallel",),        # megacore / both TCs on v7x
            vmem_limit_bytes=VMEM_LIMIT_BYTES),
        cost_estimate=cost,
    )(x, w1p, b1p, w2p, b2p)

    return out if Bp == B else out[:B]


def init_params(key):
    """Deterministic init mimicking torch.nn.Linear default (U[-1/sqrt(fan_in), ...])."""
    k1, k2, k3, k4 = jax.random.split(key, 4)
    bound1 = 1.0 / jnp.sqrt(jnp.float32(NUM_STATE))
    bound2 = 1.0 / jnp.sqrt(jnp.float32(HIDDEN))
    w1 = jax.random.uniform(k1, (NUM_STATE, HIDDEN), jnp.float32, -bound1, bound1)
    b1 = jax.random.uniform(k2, (HIDDEN,), jnp.float32, -bound1, bound1)
    w2 = jax.random.uniform(k3, (HIDDEN, NUM_ACTION), jnp.float32, -bound2, bound2)
    b2 = jax.random.uniform(k4, (NUM_ACTION,), jnp.float32, -bound2, bound2)
    return w1, b1, w2, b2


if __name__ == "__main__":
    key = jax.random.PRNGKey(0)
    kx, kp = jax.random.split(key)

    B = 8
    x = jax.random.normal(kx, (B, NUM_STATE), jnp.float32)
    w1, b1, w2, b2 = init_params(kp)

    params = prepare_params(w1, b1, w2, b2)   # one-time prep, reused every step
    forward = jax.jit(actor_forward)

    probs = forward(x, params)
    probs = jax.block_until_ready(probs)

    # Reference in plain JAX (f32 end to end, same math as the torch module).
    h_ref = jnp.maximum(x @ w1 + b1, 0.0)
    ref = jax.nn.softmax(h_ref @ w2 + b2, axis=1)

    assert probs.shape == (B, NUM_ACTION)
    # Tolerance covers bf16 MXU operands (and bf16 fc1 on v6e/v7x).
    assert jnp.allclose(probs, ref, atol=2e-2, rtol=2e-2)
    # Exact in-kernel division -> rows sum to 1 within f32 rounding.
    assert jnp.allclose(jnp.sum(probs, axis=1), 1.0, atol=1e-3)

    print("KERNEL_OK")
</pallas_src>

<mosaic_0001>
module attributes {stable_mosaic.version = 11 : i64} {
  func.func @actor_kernel(%arg0: i32, %arg1: memref<8x2xf32, #tpu.memory_space<vmem>>, %arg2: memref<2x128xf32, #tpu.memory_space<vmem>>, %arg3: memref<1x128xf32, #tpu.memory_space<vmem>>, %arg4: memref<128x128xbf16, #tpu.memory_space<vmem>>, %arg5: memref<1x128xf32, #tpu.memory_space<vmem>>, %arg6: memref<8x3xf32, #tpu.memory_space<vmem>>) attributes {dimension_semantics = [#tpu.dimension_semantics<parallel>], iteration_bounds = array<i64: 1>, scalar_prefetch = 0 : i64, scratch_operands = 0 : i64, tpu.core_type = #tpu.core_type<tc>, window_params = [{transform_indices = @transform_0, window_bounds = array<i64: 8, 2>}, {pipeline_mode = #tpu.pipeline_mode<synchronous>, transform_indices = @transform_1, window_bounds = array<i64: 2, 128>}, {pipeline_mode = #tpu.pipeline_mode<synchronous>, transform_indices = @transform_2, window_bounds = array<i64: 1, 128>}, {pipeline_mode = #tpu.pipeline_mode<synchronous>, transform_indices = @transform_3, window_bounds = array<i64: 128, 128>}, {pipeline_mode = #tpu.pipeline_mode<synchronous>, transform_indices = @transform_4, window_bounds = array<i64: 1, 128>}, {transform_indices = @transform_5, window_bounds = array<i64: 8, 3>}]} {
    %c0 = arith.constant 0 : index
    %c0_0 = arith.constant 0 : index
    %0 = vector.load %arg1[%c0, %c0_0] : memref<8x2xf32, #tpu.memory_space<vmem>>, vector<8x2xf32>
    %c0_1 = arith.constant 0 : index
    %c0_2 = arith.constant 0 : index
    %1 = vector.load %arg3[%c0_1, %c0_2] : memref<1x128xf32, #tpu.memory_space<vmem>>, vector<1x128xf32>
    %2 = vector.extract_strided_slice %0 {offsets = [0, 0], sizes = [8, 1], strides = [1, 1]} : vector<8x2xf32> to vector<8x1xf32>
    %c0_3 = arith.constant 0 : index
    %c0_4 = arith.constant 0 : index
    %3 = vector.load %arg2[%c0_3, %c0_4] : memref<2x128xf32, #tpu.memory_space<vmem>>, vector<1x128xf32>
    %4 = vector.broadcast %2 : vector<8x1xf32> to vector<8x128xf32>
    %5 = vector.broadcast %3 : vector<1x128xf32> to vector<8x128xf32>
    %6 = arith.mulf %4, %5 : vector<8x128xf32>
    %7 = vector.broadcast %1 : vector<1x128xf32> to vector<8x128xf32>
    %8 = arith.addf %7, %6 : vector<8x128xf32>
    %9 = vector.extract_strided_slice %0 {offsets = [0, 1], sizes = [8, 1], strides = [1, 1]} : vector<8x2xf32> to vector<8x1xf32>
    %c1 = arith.constant 1 : index
    %c0_5 = arith.constant 0 : index
    %10 = vector.load %arg2[%c1, %c0_5] : memref<2x128xf32, #tpu.memory_space<vmem>>, vector<1x128xf32>
    %11 = vector.broadcast %9 : vector<8x1xf32> to vector<8x128xf32>
    %12 = vector.broadcast %10 : vector<1x128xf32> to vector<8x128xf32>
    %13 = arith.mulf %11, %12 : vector<8x128xf32>
    %14 = arith.addf %8, %13 : vector<8x128xf32>
    %cst = arith.constant 0.000000e+00 : f32
    %15 = vector.broadcast %cst : f32 to vector<8x128xf32>
    %16 = arith.maximumf %14, %15 : vector<8x128xf32>
    %17 = arith.truncf %16 : vector<8x128xf32> to vector<8x128xbf16>
    %c0_6 = arith.constant 0 : index
    %c0_7 = arith.constant 0 : index
    %18 = vector.load %arg4[%c0_6, %c0_7] : memref<128x128xbf16, #tpu.memory_space<vmem>>, vector<128x128xbf16>
    %cst_8 = arith.constant dense<0.000000e+00> : vector<8x128xf32>
    %19 = tpu.matmul %17, %18, %cst_8 {dimension_numbers = #tpu.dot_dimension_numbers<[1], [0], [0], [1], [0, 0, 1, 1], [], []>} : vector<8x128xbf16>, vector<128x128xbf16>, vector<8x128xf32> -> vector<8x128xf32>
    %c0_9 = arith.constant 0 : index
    %c0_10 = arith.constant 0 : index
    %20 = vector.load %arg5[%c0_9, %c0_10] : memref<1x128xf32, #tpu.memory_space<vmem>>, vector<1x128xf32>
    %21 = vector.broadcast %20 : vector<1x128xf32> to vector<8x128xf32>
    %22 = arith.addf %19, %21 : vector<8x128xf32>
    %cst_11 = arith.constant dense<0xFF800000> : vector<8xf32>
    %23 = vector.multi_reduction <maximumf>, %22, %cst_11 [1] : vector<8x128xf32> to vector<8xf32>
    %24 = vector.shape_cast %23 : vector<8xf32> to vector<8x1xf32>
    %25 = vector.broadcast %24 : vector<8x1xf32> to vector<8x128xf32>
    %26 = arith.subf %22, %25 : vector<8x128xf32>
    %27 = math.exp %26 : vector<8x128xf32>
    %cst_12 = arith.constant dense<0.000000e+00> : vector<8xf32>
    %28 = vector.multi_reduction <add>, %27, %cst_12 [1] : vector<8x128xf32> to vector<8xf32>
    %29 = vector.shape_cast %28 : vector<8xf32> to vector<8x1xf32>
    %30 = vector.broadcast %29 : vector<8x1xf32> to vector<8x128xf32>
    %31 = arith.divf %27, %30 : vector<8x128xf32>
    %32 = vector.extract_strided_slice %31 {offsets = [0, 0], sizes = [8, 3], strides = [1, 1]} : vector<8x128xf32> to vector<8x3xf32>
    %c0_13 = arith.constant 0 : index
    %c0_14 = arith.constant 0 : index
    %33 = vector.load %arg6[%c0_13, %c0_14] : memref<8x3xf32, #tpu.memory_space<vmem>>, vector<8x3xf32>
    tpu.vector_store %arg6[%c0_13, %c0_14], %32 {strides = array<i32>} : memref<8x3xf32, #tpu.memory_space<vmem>>, vector<8x3xf32>,
    return
  }
  func.func @transform_0(%arg0: i32) -> (i32, i32) {
    %c0_i32 = arith.constant 0 : i32
    %c0_i32_0 = arith.constant 0 : i32
    return %arg0, %c0_i32 : i32, i32
  }
  func.func @transform_1(%arg0: i32) -> (i32, i32) {
    %c0_i32 = arith.constant 0 : i32
    %c0_i32_0 = arith.constant 0 : i32
    %c0_i32_1 = arith.constant 0 : i32
    return %c0_i32, %c0_i32_0 : i32, i32
  }
  func.func @transform_2(%arg0: i32) -> (i32, i32) {
    %c0_i32 = arith.constant 0 : i32
    %c0_i32_0 = arith.constant 0 : i32
    %c0_i32_1 = arith.constant 0 : i32
    return %c0_i32, %c0_i32_0 : i32, i32
  }
  func.func @transform_3(%arg0: i32) -> (i32, i32) {
    %c0_i32 = arith.constant 0 : i32
    %c0_i32_0 = arith.constant 0 : i32
    %c0_i32_1 = arith.constant 0 : i32
    return %c0_i32, %c0_i32_0 : i32, i32
  }
  func.func @transform_4(%arg0: i32) -> (i32, i32) {
    %c0_i32 = arith.constant 0 : i32
    %c0_i32_0 = arith.constant 0 : i32
    %c0_i32_1 = arith.constant 0 : i32
    return %c0_i32, %c0_i32_0 : i32, i32
  }
  func.func @transform_5(%arg0: i32) -> (i32, i32) {
    %c0_i32 = arith.constant 0 : i32
    %c0_i32_0 = arith.constant 0 : i32
    return %arg0, %c0_i32 : i32, i32
  }
}

</mosaic_0001>

<bundles_post_ra>
// kernel: actor_forward.1
= control target key start
LH: loop header
LB: loop body
LE: loop exit
PB: predicated region body
PF: predicated region fallthrough
CT: control target
= control target key end

     0   :  { %10 = vsyncpa [#allocation3], 0  ;;  %s251_s21 = smov [#allocation2]   ;;  %s252_s23 = smov 64   ;;  %s307_s0 = inlined_call_operand.vmem [shape: f32[8,2], index: 0, kind: input, shape index: {}]   ;;  %s308_s1 = inlined_call_operand.vmem [shape: f32[2,128], index: 1, kind: input, shape index: {}]   ;;  %s309_s2 = inlined_call_operand.vmem [shape: f32[1,128], index: 2, kind: input, shape index: {}]   ;;  %s310_s3 = inlined_call_operand.hbm [shape: bf16[128,128], index: 3, kind: input, shape index: {}]   ;;  %s311_s4 = inlined_call_operand.vmem [shape: f32[1,128], index: 4, kind: input, shape index: {}]   ;;  %s312_s5 = inlined_call_operand.vmem [shape: f32[8,3], index: 5, kind: output, shape index: {}]  }
   0x1   :  { %s21_s20 = sshll.u32 %s310_s3, 4  ;;  %s23_s22 = sshll.u32 %s251_s21, 4  ;;  %s22_s20 = int_to_ptr.hbm [resolvable:$true] %s21_s20  ;;  %s24_s22 = int_to_ptr.vmem [resolvable:$true] %s23_s22 }
   0x2   :  { %s253_s24 = smov 4  }
   0x3   :  { %29 = dma.hbm_to_vmem [thread:$0]  %s22_s20, 1024, %s24_s22, [#allocation3], %s252_s23, %s252_s23, %s253_s24  }
   0x4   :  { %249 = dma.done.wait [#allocation3], 1024  }
   0x5   :  { %250 = vsyncadd [#allocation3], 4294966272  ;;  %v254_v0 = vmov 0   ;;  %v36_v1 = vld [vmem:[%s307_s0] sm:$0xff]  ;;  %v209_v2 = vld [vmem:[#allocation2 + $0x38] sm:$0xff]  ;;  %v255_v5 = vmov 1  }
   0x6   :  { %215 = vset.pattern.permute.xlu0 %v254_v0  ;;  %128 = vmatpush.bf16.msra.mxu0 %v209_v2  ;;  %v208_v3 = vld [vmem:[#allocation2 + $0x30] sm:$0xff]  ;;  %v207_v4 = vld [vmem:[#allocation2 + $0x28] sm:$0xff]  ;;  %v206_v6 = vld [vmem:[#allocation2 + $0x20] sm:$0xff]  ;;  %vm163_vm4 = vcmask 23552  }
   0x7   :  { %41 = vperm.xlu0 %215, %v36_v1   ;;  %v205_v7 = vld [vmem:[#allocation2 + $0x18] sm:$0xff]  ;;  %v204_v8 = vld [vmem:[#allocation2 + $0x10] sm:$0xff]  ;;  %v203_v9 = vld [vmem:[#allocation2 + $0x8] sm:$0xff] }
   0x8   :  { %v202_v10 = vld [vmem:[#allocation2] sm:$0xff] }
   0x9   :  { %v217_v12 = vld [vmem:[%s308_s1] ss:$0 sm:$0xff]  ;;  %v219_v15 = vld [vmem:[%s308_s1 + $0x1] ss:$0 sm:$0xff] }
   0xa   :  { %129 = vmatpush.bf16.msra.mxu0 %v208_v3  ;;  %v218_v13 = vld [vmem:[%s309_s2] ss:$0 sm:$0xff] }
   0xb   :  { %v220_v22 = vld [vmem:[%s311_s4] ss:$0 sm:$0xff] }
   0xe   :  { %130 = vmatpush.bf16.msra.mxu0 %v207_v4 }
   0xf   :  { %216 = vset.pattern.permute.xlu0 %v255_v5 }
  0x10   :  { %52 = vperm.xlu0 %216, %v36_v1  }
  0x12   :  { %131 = vmatpush.bf16.msra.mxu0 %v206_v6 }
  0x16   :  { %132 = vmatpush.bf16.msra.mxu0 %v205_v7 }
  0x1a   :  { %133 = vmatpush.bf16.msra.mxu0 %v204_v8 }
  0x1e   :  { %134 = vmatpush.bf16.msra.mxu0 %v203_v9 }
  0x22   :  { %135 = vmatpush.bf16.msra.mxu0 %v202_v10 }
  0x79   :  { %v42_v11 = vpop.permute.xlu0 %41 }
  0x7a   :  { %v45_v14 = vmul.f32 %v217_v12, %v42_v11 }
  0x7c   :  { %v49_v17 = vadd.f32 %v218_v13, %v45_v14 }
  0x82   :  { %v53_v16 = vpop.permute.xlu0 %52 }
  0x83   :  { %v56_v18 = vmul.f32 %v219_v15, %v53_v16 }
  0x85   :  { %v57_v19 = vadd.f32 %v56_v18, %v49_v17 }
  0x87   :  { %v58_v20 = vmax.f32 %v57_v19, 0.0 }
  0x89   :  { %v59_v21 = vpack.c.bf16 %v58_v20, %v58_v20 }
  0x8b   :  { %136 = vmatmul.bf16.vlgmr.msra.gmra.mxu0 %v59_v21 }
 0x108   :  { %v137_v23 = vpop.f32.mrf.mxu0 }
 0x109   :  { %v138_v24 = vadd.f32 %v220_v22, %v137_v23 }
 0x10b   :  { %141 = vmax.xlane.f32.xlu1 %v138_v24 }
 0x110   :  { %v139_v25 = vpop.f32.mrf.mxu0 }
 0x17e   :  { %v142_v26 = vpop.xlane.xlu1 %141 }
 0x17f   :  { %v143_v27 = vsub.f32 %v138_v24, %v142_v26 }
 0x181   :  { %v144_v28 = vmul.f32 1.442695, %v143_v27 }
 0x183   :  { %221 = vpow2.f32 %v144_v28 }
 0x189   :  { %v222_v29 = vpop.eup %221 }
 0x18a   :  { %146 = vadd.xlane.f32.xlu1 %v222_v29 }
 0x1fd   :  { %v147_v30 = vpop.xlane.xlu1 %146 }
 0x1fe   :  { %223 = vrcp.f32 %v147_v30  ;;  %v159_v34 = vand.u32 2147483648, %v147_v30  ;;  %v157_v36 = vand.u32 2147483647, %v147_v30  ;;  %vm153_vm1 = vweird.f32 %v147_v30 }
 0x200   :  { %v160_v38 = vor.u32 1.1754944e-38, %v159_v34  ;;  %vm158_vm3 = vcmp.eq.f32.partialorder %v157_v36, 8.507059e+37 }
 0x204   :  { %v224_v31 = vpop.eup %223 }
 0x205   :  { %v149_v32 = vmul.f32 %v224_v31, %v147_v30  ;;  %vm154_vm0 = vweird.f32 %v224_v31 }
 0x206   :  { %vm155_vm2 = vmor %vm153_vm1, %vm154_vm0 }
 0x207   :  { %v150_v33 = vsub.f32 1.0, %v149_v32 }
 0x209   :  { %v151_v35 = vmul.f32 %v224_v31, %v150_v33 }
 0x20b   :  { %v152_v37 = vadd.f32 %v224_v31, %v151_v35 }
 0x20d   :  { %v156_v39 = vsel %vm155_vm2, %v224_v31, %v152_v37 }
 0x20e   :  { %v161_v40 = vsel %vm158_vm3, %v160_v38, %v156_v39 }
 0x20f   :  { %v162_v41 = vmul.f32 %v222_v29, %v161_v40 }
 0x211   :  { %164 = vst.msk [vmem:[%s312_s5] sm:$0xff] %vm163_vm4, %v162_v41 }
 0x212   :  { %169 = vsyncpa [#allocation3], 1 }

</bundles_post_ra>
